<compile_context>
chip_gen: v6e
topology: v6e:2x2x1
jax: 0.10.0
libtpu: 0.0.40
codegen_flags: <defaults>
</compile_context>

<pallas_src>
import functools

import numpy as np

import jax
import jax.numpy as jnp
from jax import lax
from jax.experimental import pallas as pl
from jax.experimental.pallas import tpu as pltpu

EPS = 1e-5
K3 = 3                        # conv kernel size (3x3x3)
NTAPS = K3 * K3 * K3          # 27


# --------------------------------------------------------------------------
# pltpu.roll direction probe (tiny one-off kernel, cached)
# --------------------------------------------------------------------------
@functools.lru_cache(maxsize=None)
def _roll_is_jnp_convention() -> bool:
    """True if pltpu.roll matches jnp.roll: out[i] = in[(i - shift) % n]."""
    def k(x_ref, o_ref):
        o_ref[...] = pltpu.roll(x_ref[...], 1, axis=1)

    x = jnp.broadcast_to(jnp.arange(128, dtype=jnp.float32), (8, 128))
    y = pl.pallas_call(
        k, out_shape=jax.ShapeDtypeStruct((8, 128), jnp.float32))(x)
    return float(jax.device_get(y)[0, 1]) == 0.0


# --------------------------------------------------------------------------
# Tap bookkeeping (host-side constants)
# --------------------------------------------------------------------------
def _tap_masks_and_shifts(N, D, H, W, roll_forward):
    """Boundary masks (one row per 3x3x3 tap) and lane-roll amounts.

    Voxels are flattened as r = ((n*D + d)*H + h)*W + w; tap (kd, kh, kw)
    reads voxel r + off with off = (kd*H + kh)*W + kw, i.e. a lane roll of the
    (C, R) activation slab.  The mask zeroes positions whose neighbour falls
    outside the DxHxW volume (== the conv's zero padding).
    """
    R = N * D * H * W
    dd, hh, ww = np.meshgrid(np.arange(D), np.arange(H), np.arange(W),
                             indexing="ij")
    masks, taps = [], []
    t = 0
    for kd in (-1, 0, 1):
        for kh in (-1, 0, 1):
            for kw in (-1, 0, 1):
                valid = ((dd + kd >= 0) & (dd + kd < D) &
                         (hh + kh >= 0) & (hh + kh < H) &
                         (ww + kw >= 0) & (ww + kw < W))
                masks.append(np.broadcast_to(valid, (N, D, H, W))
                             .reshape(R).astype(np.float32))
                off = (kd * H + kh) * W + kw
                if off == 0:
                    taps.append((t, None))           # centre tap: no shift/mask
                else:
                    shift = (-off) % R if roll_forward else off % R
                    taps.append((t, int(shift)))
                t += 1
    return np.stack(masks), taps


# --------------------------------------------------------------------------
# Fused Pallas kernel
# --------------------------------------------------------------------------
def _build_fused_kernel(R, Cp, taps):
    """Whole ShallowResnetBlock3d forward on a VMEM-resident (Cp, R) slab."""

    def conv3x3x3(v, w_ref, m_ref):
        # v: (Cp, R) f32 activations; w_ref: (27, Cp, Cp) bf16 per-tap weights.
        acc = jnp.zeros((Cp, R), jnp.float32)
        for t, shift in taps:
            if shift is None:                          # centre tap
                sh = v
            else:                                      # in-kernel "im2col"
                sh = pltpu.roll(v, shift, axis=1) * m_ref[pl.ds(t, 1), :]
            acc = acc + jnp.dot(w_ref[t], sh.astype(jnp.bfloat16),
                                preferred_element_type=jnp.float32)
        return acc

    def bn_train(y, g, b):                             # training-mode BatchNorm3d
        mean = jnp.mean(y, axis=1, keepdims=True)
        var = jnp.mean(jnp.square(y - mean), axis=1, keepdims=True)  # biased
        return (y - mean) * lax.rsqrt(var + EPS) * g + b

    def kernel(x_ref, m_ref, w1_ref, w2_ref, wsc_ref,
               g1_ref, be1_ref, g2_ref, be2_ref, o_ref):
        x = x_ref[...]                                               # (Cp, R) f32

        # shortcut: 1x1x1 conv, bias=False
        residual = jnp.dot(wsc_ref[...], x.astype(jnp.bfloat16),
                           preferred_element_type=jnp.float32)       # (Cp, R)

        # block1 + ReLU (conv bias omitted: exactly cancelled by training BN)
        h = jnp.maximum(
            bn_train(conv3x3x3(x, w1_ref, m_ref), g1_ref[...], be1_ref[...]),
            0.0)

        # block2 + BN + residual add + ReLU, all fused
        y2 = conv3x3x3(h, w2_ref, m_ref)
        o_ref[...] = jnp.maximum(
            bn_train(y2, g2_ref[...], be2_ref[...]) + residual, 0.0)

    return kernel


def _full_spec(shape):
    return pl.BlockSpec(shape, lambda i: (0,) * len(shape))


@jax.jit
def shallow_resnet_block3d(x_ncdhw, params):
    """Pallas implementation of ShallowResnetBlock3d.forward (NCDHW in/out)."""
    N, Ci, D, H, W = x_ncdhw.shape
    Co = params["wsc"].shape[0]
    R = N * D * H * W
    Cp = max(8, -(-max(Ci, Co) // 8) * 8)     # channel rows padded to sublanes
    assert R % 128 == 0, "flattened voxel count must be lane aligned"

    # layout: channels on sublanes (padded to Cp), flattened voxels on lanes
    x_t = jnp.transpose(x_ncdhw, (1, 0, 2, 3, 4)).reshape(Ci, R)
    x_t = jnp.pad(x_t, ((0, Cp - Ci), (0, 0)))

    masks_np, taps = _tap_masks_and_shifts(N, D, H, W,
                                           _roll_is_jnp_convention())
    masks = jnp.asarray(masks_np)                                   # (27, R) f32

    w1 = jnp.pad(params["w1"], ((0, 0), (0, Cp - Ci), (0, Cp - Ci)))
    w2 = jnp.pad(params["w2"], ((0, 0), (0, Cp - Co), (0, Cp - Ci)))
    wsc = jnp.pad(params["wsc"], ((0, Cp - Co), (0, Cp - Ci)))
    g1 = jnp.pad(params["g1"], (0, Cp - Ci)).reshape(Cp, 1)
    be1 = jnp.pad(params["be1"], (0, Cp - Ci)).reshape(Cp, 1)
    g2 = jnp.pad(params["g2"], (0, Cp - Co)).reshape(Cp, 1)
    be2 = jnp.pad(params["be2"], (0, Cp - Co)).reshape(Cp, 1)

    kernel = _build_fused_kernel(R, Cp, taps)
    out_t = pl.pallas_call(
        kernel,
        out_shape=jax.ShapeDtypeStruct((Cp, R), jnp.float32),
        grid_spec=pltpu.PrefetchScalarGridSpec(
            num_scalar_prefetch=0,
            grid=(1,),                               # whole block fits in VMEM
            in_specs=[
                _full_spec((Cp, R)),                 # x
                _full_spec((NTAPS, R)),              # tap boundary masks
                _full_spec((NTAPS, Cp, Cp)),         # w1 (per-tap)
                _full_spec((NTAPS, Cp, Cp)),         # w2 (per-tap)
                _full_spec((Cp, Cp)),                # shortcut weight
                _full_spec((Cp, 1)), _full_spec((Cp, 1)),   # gamma1, beta1
                _full_spec((Cp, 1)), _full_spec((Cp, 1)),   # gamma2, beta2
            ],
            out_specs=_full_spec((Cp, R)),
        ),
        compiler_params=pltpu.CompilerParams(
            dimension_semantics=("arbitrary",)),
    )(x_t, masks, w1, w2, wsc, g1, be1, g2, be2)

    out = out_t[:Co].reshape(Co, N, D, H, W)
    return jnp.transpose(out, (1, 0, 2, 3, 4))       # (C,N,D,H,W) -> NCDHW


# --------------------------------------------------------------------------
# Parameters and pure-JAX reference (mirrors the torch module's math)
# --------------------------------------------------------------------------
def make_params(key, cin, cout):
    """Conv weights stored per tap as (27, C_out, C_in), bf16 operands."""
    ks = jax.random.split(key, 9)
    return {
        "w1": (0.1 * jax.random.normal(ks[0], (NTAPS, cin, cin))).astype(jnp.bfloat16),
        "b1": 0.05 * jax.random.normal(ks[1], (cin,)),
        "g1": 1.0 + 0.1 * jax.random.normal(ks[2], (cin,)),
        "be1": 0.1 * jax.random.normal(ks[3], (cin,)),
        "w2": (0.1 * jax.random.normal(ks[4], (NTAPS, cout, cin))).astype(jnp.bfloat16),
        "b2": 0.05 * jax.random.normal(ks[5], (cout,)),
        "g2": 1.0 + 0.1 * jax.random.normal(ks[6], (cout,)),
        "be2": 0.1 * jax.random.normal(ks[7], (cout,)),
        "wsc": (0.1 * jax.random.normal(ks[8], (cout, cin))).astype(jnp.bfloat16),
    }


def _im2col_3d(x_ndhwc):
    """(N, D, H, W, C) -> (N*D*H*W, 27, C) patches of a 3x3x3 SAME conv."""
    N, D, H, W, C = x_ndhwc.shape
    xp = jnp.pad(x_ndhwc, ((0, 0), (1, 1), (1, 1), (1, 1), (0, 0)))
    cols = []
    for kd in range(K3):
        for kh in range(K3):
            for kw in range(K3):
                cols.append(xp[:, kd:kd + D, kh:kh + H, kw:kw + W, :])
    return jnp.stack(cols, axis=-2).reshape(N * D * H * W, NTAPS, C)


def _ref_bn(y, g, b):
    mean = jnp.mean(y, axis=0, keepdims=True)
    var = jnp.mean(jnp.square(y - mean), axis=0, keepdims=True)     # biased
    return (y - mean) * lax.rsqrt(var + EPS) * g + b


def ref_forward(x_ncdhw, params):
    """Pure-JAX reference (same math as the torch module, incl. conv biases)."""
    N, Ci, D, H, W = x_ncdhw.shape
    Co = params["wsc"].shape[0]
    R = N * D * H * W

    x = jnp.transpose(x_ncdhw, (0, 2, 3, 4, 1))                    # NCDHW -> NDHWC
    xb = x.astype(jnp.bfloat16)

    residual = jnp.dot(xb.reshape(R, Ci), params["wsc"].T,
                       preferred_element_type=jnp.float32)          # (R, Co)

    p1 = _im2col_3d(xb)                                             # (R, 27, Ci)
    y1 = jnp.einsum("rkc,koc->ro", p1, params["w1"],
                    preferred_element_type=jnp.float32) + params["b1"]
    h = jnp.maximum(_ref_bn(y1, params["g1"], params["be1"]), 0.0)

    p2 = _im2col_3d(h.reshape(N, D, H, W, Ci).astype(jnp.bfloat16))
    y2 = jnp.einsum("rkc,koc->ro", p2, params["w2"],
                    preferred_element_type=jnp.float32) + params["b2"]
    out = jnp.maximum(_ref_bn(y2, params["g2"], params["be2"]) + residual, 0.0)

    return jnp.transpose(out.reshape(N, D, H, W, Co), (0, 4, 1, 2, 3))


# --------------------------------------------------------------------------
if __name__ == "__main__":
    key = jax.random.PRNGKey(0)
    k_x, k_p = jax.random.split(key)

    N, Ci, Co, S = 2, 4, 8, 8                     # batch, in-ch, out-ch, spatial
    x = jax.random.normal(k_x, (N, Ci, S, S, S), jnp.float32)       # NCDHW (torch)
    params = make_params(k_p, Ci, Co)

    _roll_is_jnp_convention()                      # warm the tiny probe kernel

    out = jax.block_until_ready(shallow_resnet_block3d(x, params))
    ref = jax.block_until_ready(ref_forward(x, params))

    assert out.shape == (N, Co, S, S, S), out.shape
    # Kernel and reference consume bit-identical bf16 operands; remaining
    # differences are f32 accumulation order and bf16 rounding of the
    # intermediate activation h, so 1e-2 is a loose but meaningful bound
    # (structural bugs show up as O(1) errors).
    err = float(jnp.max(jnp.abs(out - ref)))
    assert jnp.allclose(out, ref, rtol=1e-2, atol=1e-2), err

    print("KERNEL_OK")
</pallas_src>

<mosaic_0001>
module attributes {stable_mosaic.version = 11 : i64} {
  func.func @k(%arg0: memref<8x128xf32, #tpu.memory_space<vmem>>, %arg1: memref<8x128xf32, #tpu.memory_space<vmem>>) attributes {dimension_semantics = [], scalar_prefetch = 0 : i64, scratch_operands = 0 : i64, tpu.core_type = #tpu.core_type<tc>} {
    %c0 = arith.constant 0 : index
    %c0_0 = arith.constant 0 : index
    %0 = vector.load %arg0[%c0, %c0_0] : memref<8x128xf32, #tpu.memory_space<vmem>>, vector<8x128xf32>
    %c1_i32 = arith.constant 1 : i32
    %1 = tpu.dynamic_rotate %0 by %c1_i32 dim 1 : vector<8x128xf32>, i32 -> vector<8x128xf32>
    %c0_1 = arith.constant 0 : index
    %c0_2 = arith.constant 0 : index
    %2 = vector.load %arg1[%c0_1, %c0_2] : memref<8x128xf32, #tpu.memory_space<vmem>>, vector<8x128xf32>
    tpu.vector_store %arg1[%c0_1, %c0_2], %1 {strides = array<i32>} : memref<8x128xf32, #tpu.memory_space<vmem>>, vector<8x128xf32>,
    return
  }
}

</mosaic_0001>

<bundles_post_ra>
// kernel: tpu_custom_call.1
= control target key start
LH: loop header
LB: loop body
LE: loop exit
PB: predicated region body
PF: predicated region fallthrough
CT: control target
= control target key end

     0   :  { %6 = vsyncpa [#allocation3], 0  ;;  %s106_s0 = inlined_call_operand.hbm [shape: f32[8,128], index: 0, kind: input, shape index: {}]   ;;  %s107_s1 = inlined_call_operand.hbm [shape: f32[8,128], index: 1, kind: output, shape index: {}]  }
   0x1   :  { %7 = vsyncpa [#allocation4], 0  ;;  %s87_s6 = smov [#allocation2]  }
   0x2   :  { %s14_s7 = sshll.u32 %s87_s6, 4  ;;  %s15_s7 = int_to_ptr.vmem [resolvable:$true] %s14_s7 }
   0x3   :  { %s51_s8 = scalar_lea.vmem %s15_s7, 128  ;;  %p56_p1 = scmp.lt.s32.totalorder %s15_s7, %s15_s7 }
   0x4   :  { %p52_p0 = scmp.ne.s32.totalorder %s15_s7, %s51_s8  ;;  %p57_p2 = scmp.lt.s32.totalorder %s51_s8, %s51_s8 }
   0x6   :  { %p58_p3 = por %p57_p2, %p56_p1 }
   0x8   :  { %p59_p4 = pnand %p58_p3, %p52_p0 }
   0xa   :  { %62 = shalt.err (!%p59_p4)
}
   0xb   :  { %17 = dma.hbm_to_vmem [thread:$0]  %s106_s0, 128, %s15_s7, [#allocation3]  }
   0xc   :  { %83 = dma.done.wait [#allocation3], 128  }
   0xd   :  { %84 = vsyncadd [#allocation3], 4294967168  ;;  %v21_v0 = vld [vmem:[#allocation2] sm:$0xff]  ;;  %s88_s11 = smov 1   ;;  %s89_s12 = smov [#allocation5]  }
   0xe   :  { %22 = vrot.lane.b32.xlu0 %v21_v0, %s88_s11  ;;  %s31_s13 = sshll.u32 %s89_s12, 4  ;;  %s32_s13 = int_to_ptr.vmem [resolvable:$true] %s31_s13 }
   0xf   :  { %s63_s14 = scalar_lea.vmem %s32_s13, 128  ;;  %p68_p6 = scmp.lt.s32.totalorder %s32_s13, %s32_s13 }
  0x10   :  { %p64_p5 = scmp.ne.s32.totalorder %s32_s13, %s63_s14  ;;  %p69_p7 = scmp.lt.s32.totalorder %s63_s14, %s63_s14 }
  0x12   :  { %p70_p8 = por %p69_p7, %p68_p6 }
  0x14   :  { %p71_p9 = pnand %p70_p8, %p64_p5 }
  0x80   :  { %v23_v1 = vpop.permute.xlu0 %22 }
  0x81   :  { %24 = vst [vmem:[#allocation5] sm:$0xff] %v23_v1 }
  0x82   :  { %74 = shalt.err (!%p71_p9)
}
  0x83   :  { %34 = dma.vmem_to_hbm [thread:$0]  %s32_s13, 128, %s107_s1, [#allocation4]  }
  0x84   :  { %85 = dma.done.wait [#allocation4], 128  }
  0x85   :  { %86 = vsyncadd [#allocation4], 4294967168 }
  0x86   :  { %38 = vsyncpa [#allocation3], 1 }
  0x87   :  { %39 = vsyncpa [#allocation4], 1 }

</bundles_post_ra>
